<compile_context>
chip_gen: v7x
topology: tpu7x:2x2x1
jax: 0.10.0
libtpu: 0.0.40
codegen_flags: <defaults>
</compile_context>

<pallas_src>
import jax
import jax.numpy as jnp
from jax.experimental import pallas as pl
from jax.experimental.pallas import tpu as pltpu

EPS = 1e-5  # nn.LayerNorm default (the module's eps=1e-6 arg is ignored by the ctor)


def _layernorm_kernel(x_ref, w_ref, b_ref, o_ref):
    # x_ref/o_ref: (g_tile, D, tile_n) ; w_ref/b_ref: (1, D, 1)
    x = x_ref[...].astype(jnp.float32)
    mean = jnp.mean(x, axis=1, keepdims=True)            # reduce over D (sublanes)
    ex2 = jnp.mean(x * x, axis=1, keepdims=True)
    var = jnp.maximum(ex2 - mean * mean, 0.0)            # one-pass biased variance
    inv = jax.lax.rsqrt(var + EPS)                       # EUP slot (free-ish)
    w = w_ref[...].astype(jnp.float32)
    b = b_ref[...].astype(jnp.float32)
    scale = inv * w                                      # (g, D, n)
    shift = b - mean * scale
    o_ref[...] = (x * scale + shift).astype(o_ref.dtype)


def _cdiv(a, b):
    return -(-a // b)


def _default_budgets():
    """(target_block_bytes, vmem_limit_bytes) tuned per TPU generation."""
    try:
        kind = jax.devices()[0].device_kind.lower()
    except Exception:  # pragma: no cover - defensive
        kind = ""
    if "v7" in kind:
        # v7x: only 64 MiB VMEM per TC -> ~4 MiB blocks, ~48 MiB scoped limit.
        return 4 * 1024 * 1024, 48 * 1024 * 1024
    # v5e / v6e: 128 MiB physical VMEM -> ~8 MiB blocks, ~64 MiB scoped limit.
    return 8 * 1024 * 1024, 64 * 1024 * 1024


def modern_tcn_layernorm(x, weight, bias, *,
                         target_block_bytes=None,
                         vmem_limit_bytes=None):
    """LayerNorm over the D axis of x: (B, M, D, N). Returns same shape/dtype."""
    B, M, D, N = x.shape
    G = B * M
    x3 = x.reshape(G, D, N)
    itemsize = jnp.dtype(x.dtype).itemsize

    def_tb, def_vl = _default_budgets()
    if target_block_bytes is None:
        target_block_bytes = def_tb
    if vmem_limit_bytes is None:
        vmem_limit_bytes = def_vl

    row_bytes = D * N * itemsize  # one (1, D, N) slab; contiguous in HBM

    if row_bytes <= target_block_bytes:
        # Full-N tiles (contiguous DMA per g-slab); fold batch rows into a block.
        tile_n = N
        g_tile = max(1, min(G, target_block_bytes // row_bytes))
        # Guarantee >= 2 blocks along the parallel g-axis so v7x can shard the
        # grid across its 2 TensorCores.
        if G >= 2:
            g_tile = min(g_tile, _cdiv(G, 2))
    else:
        # A single g-row exceeds the budget -> split N into 128-aligned chunks.
        tile_n = max(128, (target_block_bytes // (D * itemsize)) // 128 * 128)
        if tile_n >= N:
            tile_n = N
        g_tile = 1

    grid = (pl.cdiv(G, g_tile), pl.cdiv(N, tile_n))

    # Make sure the scoped VMEM limit covers double-buffered in/out blocks plus
    # in-kernel f32 intermediates (matters for large D and sub-f32 dtypes).
    block_bytes = g_tile * D * tile_n * itemsize
    f32_bytes = g_tile * D * tile_n * 4
    vmem_limit_bytes = int(max(vmem_limit_bytes,
                               4 * block_bytes + 3 * f32_bytes + (1 << 20)))
    # TODO(synk): for pathological D (a single 128-lane column exceeding the
    # block budget), fall back to a D-chunked two-pass scheme instead of only
    # growing the VMEM limit.

    w3 = weight.reshape(1, D, 1)
    b3 = bias.reshape(1, D, 1)

    y3 = pl.pallas_call(
        _layernorm_kernel,
        out_shape=jax.ShapeDtypeStruct((G, D, N), x.dtype),
        grid_spec=pltpu.PrefetchScalarGridSpec(
            num_scalar_prefetch=0,
            grid=grid,
            in_specs=[
                pl.BlockSpec((g_tile, D, tile_n), lambda g, j: (g, 0, j)),
                pl.BlockSpec((1, D, 1), lambda g, j: (0, 0, 0)),
                pl.BlockSpec((1, D, 1), lambda g, j: (0, 0, 0)),
            ],
            out_specs=pl.BlockSpec((g_tile, D, tile_n), lambda g, j: (g, 0, j)),
        ),
        compiler_params=pltpu.CompilerParams(
            dimension_semantics=("parallel", "parallel"),
            vmem_limit_bytes=vmem_limit_bytes,
        ),
    )(x3, w3, b3)

    return y3.reshape(B, M, D, N)


def _reference(x, weight, bias):
    # pure-JAX reference of the PyTorch forward
    mean = jnp.mean(x, axis=2, keepdims=True)
    var = jnp.mean((x - mean) ** 2, axis=2, keepdims=True)
    xn = (x - mean) / jnp.sqrt(var + EPS)
    return xn * weight[None, None, :, None] + bias[None, None, :, None]


def _check(B, M, D, N, key):
    kx, kw, kb = jax.random.split(key, 3)
    x = jax.random.normal(kx, (B, M, D, N), dtype=jnp.float32)
    weight = 1.0 + 0.1 * jax.random.normal(kw, (D,), dtype=jnp.float32)
    bias = 0.1 * jax.random.normal(kb, (D,), dtype=jnp.float32)

    out = modern_tcn_layernorm(x, weight, bias)
    out = jax.block_until_ready(out)

    ref = _reference(x, weight, bias)
    assert out.shape == (B, M, D, N)
    assert jnp.allclose(out, ref, atol=1e-4, rtol=1e-5), "mismatch vs reference"


if __name__ == "__main__":
    key = jax.random.PRNGKey(0)
    k1, k2 = jax.random.split(key)

    # Small shape consistent with the (B, M, D, N) layout.
    _check(2, 3, 32, 16, k1)
    # Shape exercising a ragged leading grid axis (G=5 not divisible by g_tile).
    _check(1, 5, 16, 8, k2)

    print("KERNEL_OK")
</pallas_src>

<mosaic_0001>
module attributes {stable_mosaic.version = 11 : i64} {
  func.func @_layernorm_kernel(%arg0: i32, %arg1: i32, %arg2: memref<3x32x16xf32, #tpu.memory_space<vmem>>, %arg3: memref<1x32x1xf32, #tpu.memory_space<vmem>>, %arg4: memref<1x32x1xf32, #tpu.memory_space<vmem>>, %arg5: memref<3x32x16xf32, #tpu.memory_space<vmem>>) attributes {dimension_semantics = [#tpu.dimension_semantics<parallel>, #tpu.dimension_semantics<parallel>], iteration_bounds = array<i64: 2, 1>, scalar_prefetch = 0 : i64, scratch_operands = 0 : i64, tpu.core_type = #tpu.core_type<tc>, window_params = [{transform_indices = @transform_0, window_bounds = array<i64: 3, 32, 16>}, {pipeline_mode = #tpu.pipeline_mode<synchronous>, transform_indices = @transform_1, window_bounds = array<i64: 1, 32, 1>}, {pipeline_mode = #tpu.pipeline_mode<synchronous>, transform_indices = @transform_2, window_bounds = array<i64: 1, 32, 1>}, {transform_indices = @transform_3, window_bounds = array<i64: 3, 32, 16>}]} {
    %c0 = arith.constant 0 : index
    %c0_0 = arith.constant 0 : index
    %c0_1 = arith.constant 0 : index
    %0 = vector.load %arg2[%c0, %c0_0, %c0_1] : memref<3x32x16xf32, #tpu.memory_space<vmem>>, vector<3x32x16xf32>
    %cst = arith.constant dense<0.000000e+00> : vector<3x16xf32>
    %1 = vector.multi_reduction <add>, %0, %cst [1] : vector<3x32x16xf32> to vector<3x16xf32>
    %2 = vector.shape_cast %1 : vector<3x16xf32> to vector<3x1x16xf32>
    %cst_2 = arith.constant 3.200000e+01 : f32
    %3 = vector.broadcast %cst_2 : f32 to vector<3x1x16xf32>
    %4 = arith.divf %2, %3 : vector<3x1x16xf32>
    %5 = arith.mulf %0, %0 : vector<3x32x16xf32>
    %cst_3 = arith.constant dense<0.000000e+00> : vector<3x16xf32>
    %6 = vector.multi_reduction <add>, %5, %cst_3 [1] : vector<3x32x16xf32> to vector<3x16xf32>
    %7 = vector.shape_cast %6 : vector<3x16xf32> to vector<3x1x16xf32>
    %cst_4 = arith.constant 3.200000e+01 : f32
    %8 = vector.broadcast %cst_4 : f32 to vector<3x1x16xf32>
    %9 = arith.divf %7, %8 : vector<3x1x16xf32>
    %10 = arith.mulf %4, %4 : vector<3x1x16xf32>
    %11 = arith.subf %9, %10 : vector<3x1x16xf32>
    %cst_5 = arith.constant 0.000000e+00 : f32
    %12 = vector.broadcast %cst_5 : f32 to vector<3x1x16xf32>
    %13 = arith.maximumf %11, %12 : vector<3x1x16xf32>
    %cst_6 = arith.constant 9.99999974E-6 : f32
    %14 = vector.broadcast %cst_6 : f32 to vector<3x1x16xf32>
    %15 = arith.addf %13, %14 : vector<3x1x16xf32>
    %16 = math.rsqrt %15 : vector<3x1x16xf32>
    %c0_7 = arith.constant 0 : index
    %c0_8 = arith.constant 0 : index
    %c0_9 = arith.constant 0 : index
    %17 = vector.load %arg3[%c0_7, %c0_8, %c0_9] : memref<1x32x1xf32, #tpu.memory_space<vmem>>, vector<1x32x1xf32>
    %c0_10 = arith.constant 0 : index
    %c0_11 = arith.constant 0 : index
    %c0_12 = arith.constant 0 : index
    %18 = vector.load %arg4[%c0_10, %c0_11, %c0_12] : memref<1x32x1xf32, #tpu.memory_space<vmem>>, vector<1x32x1xf32>
    %19 = vector.broadcast %16 : vector<3x1x16xf32> to vector<3x32x16xf32>
    %20 = vector.broadcast %17 : vector<1x32x1xf32> to vector<3x32x16xf32>
    %21 = arith.mulf %19, %20 : vector<3x32x16xf32>
    %22 = vector.broadcast %4 : vector<3x1x16xf32> to vector<3x32x16xf32>
    %23 = arith.mulf %22, %21 : vector<3x32x16xf32>
    %24 = vector.broadcast %18 : vector<1x32x1xf32> to vector<3x32x16xf32>
    %25 = arith.subf %24, %23 : vector<3x32x16xf32>
    %26 = arith.mulf %0, %21 : vector<3x32x16xf32>
    %27 = arith.addf %26, %25 : vector<3x32x16xf32>
    %c0_13 = arith.constant 0 : index
    %c0_14 = arith.constant 0 : index
    %c0_15 = arith.constant 0 : index
    %28 = vector.load %arg5[%c0_13, %c0_14, %c0_15] : memref<3x32x16xf32, #tpu.memory_space<vmem>>, vector<3x32x16xf32>
    tpu.vector_store %arg5[%c0_13, %c0_14, %c0_15], %27 {strides = array<i32>} : memref<3x32x16xf32, #tpu.memory_space<vmem>>, vector<3x32x16xf32>,
    return
  }
  func.func @transform_0(%arg0: i32, %arg1: i32) -> (i32, i32, i32) {
    %c0_i32 = arith.constant 0 : i32
    %c0_i32_0 = arith.constant 0 : i32
    return %arg0, %c0_i32, %arg1 : i32, i32, i32
  }
  func.func @transform_1(%arg0: i32, %arg1: i32) -> (i32, i32, i32) {
    %c0_i32 = arith.constant 0 : i32
    %c0_i32_0 = arith.constant 0 : i32
    %c0_i32_1 = arith.constant 0 : i32
    %c0_i32_2 = arith.constant 0 : i32
    return %c0_i32, %c0_i32_0, %c0_i32_1 : i32, i32, i32
  }
  func.func @transform_2(%arg0: i32, %arg1: i32) -> (i32, i32, i32) {
    %c0_i32 = arith.constant 0 : i32
    %c0_i32_0 = arith.constant 0 : i32
    %c0_i32_1 = arith.constant 0 : i32
    %c0_i32_2 = arith.constant 0 : i32
    return %c0_i32, %c0_i32_0, %c0_i32_1 : i32, i32, i32
  }
  func.func @transform_3(%arg0: i32, %arg1: i32) -> (i32, i32, i32) {
    %c0_i32 = arith.constant 0 : i32
    %c0_i32_0 = arith.constant 0 : i32
    return %arg0, %c0_i32, %arg1 : i32, i32, i32
  }
}

</mosaic_0001>

<bundles_post_ra>
// kernel: tpu_custom_call.1
= control target key start
LH: loop header
LB: loop body
LE: loop exit
PB: predicated region body
PF: predicated region fallthrough
CT: control target
= control target key end

     0   :  { %8 = vsyncpa [#allocation3], 0  ;;  %s1343_s0 = inlined_call_operand.hbm [shape: f32[6,32,16], index: 0, kind: input, shape index: {}]   ;;  %s1344_s1 = inlined_call_operand.hbm [shape: f32[1,32,1], index: 1, kind: input, shape index: {}]   ;;  %s1345_s2 = inlined_call_operand.hbm [shape: f32[1,32,1], index: 2, kind: input, shape index: {}]   ;;  %s1346_s3 = inlined_call_operand.hbm [shape: f32[6,32,16], index: 3, kind: output, shape index: {}]  }
   0x1   :  { %10 = vsyncpa [#allocation3 + $0x1], 0 }
   0x2   :  { %11 = vsyncpa [#allocation6], 0 }
   0x3   :  { %12 = vsyncpa [#allocation4], 0 }
   0x4   :  { %14 = vsyncpa [#allocation4 + $0x1], 0  ;;  %s925_s12 = smov 0   ;;  %s927_s13 = smov 0  }
   0x5   :  { %s929_s14 = smov 0   ;;  %s931_s15 = smov 0  }
   0x6   :  { %s933_s16 = smov 0   ;;  %s935_s17 = smov 0  }
   0x7 LB: > { %s603_s18 = sadd.s32 4294967295, %s894_s17   ;;  %s604_s19 = sadd.s32 4294967294, %s894_s17   ;;  %s894_s17 = sphi %s935_s17, %s20_s17   ;;  %s890_s16 = sphi %s933_s16, %s1368_s16   ;;  %s886_s15 = sphi %s931_s15, %s1367_s15   ;;  %s882_s14 = sphi %s929_s14, %s1366_s14   ;;  %s878_s13 = sphi %s927_s13, %s1365_s13   ;;  %s874_s12 = sphi %s925_s12, %s1364_s12  }
   0x8   : > { %p54_p0 = scmp.ne.s32.totalorder %s878_s13, %s874_s12  ;;  %p959_p1 = scmp.eq.s32.totalorder %s603_s18, 0 }
   0x9   : > { %p963_p2 = scmp.eq.s32.totalorder %s603_s18, 1  ;;  %p128_p3 = scmp.eq.s32.totalorder %s604_s19, 1 }
   0xa   : > { %s1351_s20 = scalar_select %p959_p1, 1, 0 }
   0xb   : > { %p969_p4 = por %p959_p1, %p54_p0  ;;  %p605_p5 = scmp.ge.s32.totalorder %s894_s17, 1 }
   0xc   : > { %p974_p6 = por %p128_p3, %p54_p0  ;;  %p135_p7 = scmp.lt.s32.totalorder %s894_s17, 3 }
   0xd   : > { %s1353_s22 = scalar_select %p969_p4, 1, 0 }
   0xe   : > { %s1354_s23 = scalar_select %p974_p6, 1, 0 }
   0xf   : > { %p979_p8 = pnand %p605_p5, %p135_p7  ;;  %s896_s25 = smov [#allocation5]  }
  0x10   : > { %s147_s26 = sshll.u32 %s896_s25, 4  ;;  %s897_s28 = smov [#allocation7]   ;;  %s983_s26 = int_to_ptr.vmem [resolvable:$true] %s147_s26 }
  0x11   : > { %p638_p9 = pneg %p979_p8  ;;  %s160_s29 = sshll.u32 %s897_s28, 4  ;;  %s994_s29 = int_to_ptr.vmem [resolvable:$true] %s160_s29 }
  0x12   : > { %s722_s5 = scalar_lea.hbm %s1344_s1, 512 }
  0x13   : > { %p990_p11 = pnand %p638_p9, %p959_p1  ;;  %p723_p12 = scmp.ne.s32.totalorder %s1344_s1, %s722_s5 }
  0x14   : > { %p729_p5 = scmp.lt.u32.totalorder %s722_s5, %s1344_s1 }
  0x15   : > { %p724_p13 = pneg %p990_p11 }
  0x17   : > { %p725_p0 = pnand %p724_p13, %p723_p12 }
  0x19   : > { %p726_p3 = pneg %p725_p0 }
  0x1b   : > { %p731_p7 = pnand %p729_p5, %p726_p3 }
  0x1d   : > { %734 = shalt.err (!%p731_p7)
}
  0x1e   : > { %s735_s10 = scalar_lea.vmem %s983_s26, 512  ;;  %p743_p1 = scmp.lt.s32.totalorder %s983_s26, %s983_s26 }
  0x1f   : > { %p736_p9 = scmp.ne.s32.totalorder %s983_s26, %s735_s10  ;;  %p744_p12 = scmp.lt.s32.totalorder %s735_s10, %s735_s10 }
  0x21   : > { %p738_p10 = pnand %p736_p9, %p724_p13  ;;  %p745_p0 = por %p744_p12, %p743_p1 }
  0x23   : > { %p739_p6 = pneg %p738_p10 }
  0x25   : > { %p746_p4 = pnand %p745_p0, %p739_p6 }
  0x27   : > { %749 = shalt.err (!%p746_p4)
}
  0x28   : > { %s898_s11 = smov 128   ;;  %s899_s18 = smov 8  }
  0x29   : > { %641 = dma.hbm_to_vmem [thread:$0]  (!%p990_p11), %s1344_s1, 512, %s983_s26, [#allocation6], %s898_s11, %s898_s11, %s899_s18  }
  0x2a   : > { %s750_s4 = scalar_lea.hbm %s1345_s2, 512 }
  0x2b   : > { %p751_p1 = scmp.ne.s32.totalorder %s1345_s2, %s750_s4  ;;  %p757_p10 = scmp.lt.u32.totalorder %s750_s4, %s1345_s2 }
  0x2d   : > { %p753_p4 = pnand %p751_p1, %p724_p13 }
  0x2f   : > { %p754_p6 = pneg %p753_p4 }
  0x31   : > { %p759_p3 = pnand %p757_p10, %p754_p6 }
  0x33   : > { %762 = shalt.err (!%p759_p3)
}
  0x34   : > { %s763_s26 = scalar_lea.vmem %s994_s29, 512  ;;  %p771_p12 = scmp.lt.s32.totalorder %s994_s29, %s994_s29 }
  0x35   : > { %p764_p5 = scmp.ne.s32.totalorder %s994_s29, %s763_s26  ;;  %p772_p0 = scmp.lt.s32.totalorder %s763_s26, %s763_s26 }
  0x37   : > { %p766_p7 = pnand %p764_p5, %p724_p13  ;;  %p773_p1 = por %p772_p0, %p771_p12 }
  0x39   : > { %p767_p9 = pneg %p766_p7 }
  0x3b   : > { %p774_p4 = pnand %p773_p1, %p767_p9 }
  0x3d   : > { %777 = shalt.err (!%p774_p4)
}
  0x3e   : > { %644 = dma.hbm_to_vmem [thread:$0]  (!%p990_p11), %s1345_s2, 512, %s994_s29, [#allocation6], %s898_s11, %s898_s11, %s899_s18  }
  0x3f   : > { %s32_s27 = sadd.s32 1, %s890_s16  ;;  %s41_s19 = sadd.s32 1, %s882_s14 }
  0x40   : > { %p34_p13 = scmp.ge.s32.totalorder %s32_s27, 2  ;;  %p48_p6 = scmp.ne.s32.totalorder %s882_s14, %s878_s13 }
  0x41   : > { %p49_p10 = scmp.eq.s32.totalorder %s894_s17, 0  ;;  %p655_p3 = scmp.lt.s32.totalorder %s894_s17, 2 }
  0x42   : > { %s1370_s27 = smov (%p34_p13, %s32_s27), 0  ;;  %p1064_p7 = por %p963_p2, %p48_p6 }
  0x43   : > { %p50_p5 = por %p49_p10, %p48_p6  ;;  %s36_s28 = ssub.s32 %s890_s16, %s1370_s27 }
  0x44   : > { %s1357_s25 = scalar_select %p1064_p7, 1, 0 }
  0x45   : > { %s174_s30 = sand.u32 1, %s882_s14   ;;  %p39_p9 = scmp.eq.s32.totalorder %s36_s28, 0 }
  0x46   : > { %s624_s29 = smul.u32 96, %s174_s30  ;;  %p1071_p11 = pnand %p655_p3, %p50_p5 }
  0x47   : > { %s1076_s5 = scalar_select %p39_p9, %s882_s14, %s41_s19  }
  0x48   : > { %s622_s6 = smul.u32 1536, %s890_s16  ;;  %s178_s7 = scalar_lea.vmem [#allocation2], %s624_s29 }
  0x49   : > { %s187_s8 = sshll.u32 %s178_s7, 4  ;;  %s1086_s10 = scalar_lea.sflag [#allocation3], %s174_s30  ;;  %s1084_s8 = int_to_ptr.vmem [resolvable:$true] %s187_s8 }
  0x4a   : > { %s1082_s9 = scalar_lea.hbm %s1343_s0, %s622_s6  ;;  %p780_p12 = pneg %p1071_p11 }
  0x4b   : > { %s778_s28 = scalar_lea.hbm %s1082_s9, 1536  ;;  %s783_s6 = scalar_lea.hbm %s1343_s0, 3072 }
  0x4c   : > { %p779_p2 = scmp.ne.s32.totalorder %s1082_s9, %s778_s28  ;;  %p784_p4 = scmp.lt.u32.totalorder %s1082_s9, %s1343_s0 }
  0x4d   : > { %p785_p13 = scmp.lt.u32.totalorder %s783_s6, %s778_s28  ;;  %p787_p10 = scmp.lt.u32.totalorder %s778_s28, %s1082_s9 }
  0x4e   : > { %p781_p0 = pnand %p780_p12, %p779_p2 }
  0x4f   : > { %p786_p6 = por %p785_p13, %p784_p4 }
  0x50   : > { %p782_p1 = pneg %p781_p0 }
  0x51   : > { %p788_p3 = por %p787_p10, %p786_p6 }
  0x53   : > { %p789_p5 = pnand %p788_p3, %p782_p1 }
  0x55   : > { %792 = shalt.err (!%p789_p5)
}
  0x56   : > { %s793_s30 = scalar_lea.vmem %s1084_s8, 1536  ;;  %s900_s26 = smov [#allocation2]  }
  0x57   : > { %p794_p9 = scmp.ne.s32.totalorder %s1084_s8, %s793_s30  ;;  %s798_s19 = sshll.u32 %s900_s26, 4  ;;  %s799_s19 = int_to_ptr.vmem [resolvable:$false] %s798_s19 }
  0x58   : > { %s800_s29 = scalar_lea.vmem %s799_s19, 3072  ;;  %p801_p7 = scmp.lt.s32.totalorder %s1084_s8, %s799_s19 }
  0x59   : > { %p796_p2 = pnand %p794_p9, %p780_p12  ;;  %p802_p4 = scmp.lt.s32.totalorder %s800_s29, %s793_s30 }
  0x5b   : > { %p797_p0 = pneg %p796_p2  ;;  %p803_p13 = por %p802_p4, %p801_p7 }
  0x5d   : > { %p804_p6 = pnand %p803_p13, %p797_p0 }
  0x5f   : > { %807 = shalt.err (!%p804_p6)
}
  0x60   : > { %648 = dma.hbm_to_vmem [thread:$0]  (!%p1071_p11), %s1082_s9, 1536, %s1084_s8, %s1086_s10, %s898_s11, %s898_s11, %s899_s18  }
  0x61   : > { %199 = sbr.rel (%p979_p8) target bundleno = 272 (0x110), region = 32  ;;  %s1120_s28 = sand.u32 (!%p979_p8), 1, %s878_s13  }
  0x62   : > { %s625_s6 = smul.u32 (!%p979_p8), 96, %s1120_s28  ;;  %s202_s7 = scalar_lea.sflag (!%p979_p8), [#allocation3], %s1120_s28 }
  0x63   : > { %p1359_p7 = scmp.ne.s32.totalorder (!%p979_p8), %s1353_s22, 0 }
  0x64   : > { %s1126_s4 = scalar_lea.vmem (!%p979_p8), [#allocation2], %s625_s6 }
  0x68   : > { %861 = dma.done.wait (%p1359_p7), %s202_s7, 1536  }
  0x69   : > { %863 = vsyncadd (%p1359_p7), %s202_s7, 4294965760  ;;  %p1360_p11 = scmp.ne.s32.totalorder %s1351_s20, 0 }
  0x6b   : > { %865 = dma.done.wait (%p1360_p11), [#allocation6], 1024  }
  0x6c   : > { %867 = vsyncadd (%p1360_p11), [#allocation6], 4294966272  ;;  %v901_v0 = vmov 0   ;;  %v365_v1 = vld [vmem:[#allocation5 + $0x10] sm:$0xff]  ;;  %v363_v2 = vld [vmem:[#allocation5] sm:$0xff]  ;;  %vm250_vm0 = vcmask 130048  }
  0x6d   : > { %715 = vset.pattern.permute.xlu1 %v901_v0  ;;  %714 = vset.pattern.permute.xlu0 %v901_v0  ;;  %v366_v3 = vld [vmem:[#allocation5 + $0x18] sm:$0xff]  ;;  %v364_v4 = vld [vmem:[#allocation5 + $0x8] sm:$0xff]  ;;  %v367_v6 = vld [vmem:[#allocation7] sm:$0xff]  ;;  %s623_s20 = smul.u32 1536, %s886_s15  ;;  %s235_s22 = scalar_lea.vmem [#allocation8], %s625_s6 }
  0x6e   : > { %383 = vperm.xlu1 %715, %v365_v1   ;;  %373 = vperm.xlu0 %714, %v363_v2   ;;  %v368_v5 = vld [vmem:[#allocation7 + $0x8] sm:$0xff]  ;;  %v370_v7 = vld [vmem:[#allocation7 + $0x18] sm:$0xff]  ;;  %v369_v8 = vld [vmem:[#allocation7 + $0x10] sm:$0xff]  ;;  %s499_s15 = sshll.u32 %s235_s22, 4  ;;  %s484_s8 = scalar_lea.sflag [#allocation4], %s1120_s28  ;;  %s1290_s15 = int_to_ptr.vmem [resolvable:$true] %s499_s15 }
  0x6f   : > { %v1137_v9 = vld [vmem:[%s1126_s4] sm:$0xff]  ;;  %v1140_v10 = vld [vmem:[%s1126_s4 + $0x8] sm:$0xff]  ;;  %v1155_v15 = vld [vmem:[%s1126_s4 + $0x10] sm:$0xff]  ;;  %s1286_s18 = scalar_lea.hbm %s1346_s3, %s623_s20  ;;  %s808_s9 = scalar_lea.vmem %s1290_s15, 1536 }
  0x70   : > { %v1143_v11 = vld [vmem:[%s1126_s4 + $0x20] sm:$0xff]  ;;  %v1146_v12 = vld [vmem:[%s1126_s4 + $0x28] sm:$0xff]  ;;  %v1158_v16 = vld [vmem:[%s1126_s4 + $0x30] sm:$0xff]  ;;  %v251_v17 = vsel %vm250_vm0, %v1137_v9, 0.0  ;;  %v252_v18 = vsel %vm250_vm0, %v1140_v10, 0.0  ;;  %v294_v19 = vmul.f32 %v1137_v9, %v1137_v9  ;;  %v295_v20 = vmul.f32 %v1140_v10, %v1140_v10  ;;  %p809_p8 = scmp.ne.s32.totalorder %s1290_s15, %s808_s9  ;;  %p1361_p12 = scmp.ne.s32.totalorder %s1357_s25, 0 }
  0x71   : > { %v1149_v13 = vld [vmem:[%s1126_s4 + $0x40] sm:$0xff]  ;;  %v1152_v14 = vld [vmem:[%s1126_s4 + $0x48] sm:$0xff]  ;;  %v264_v21 = vsel %vm250_vm0, %v1143_v11, 0.0  ;;  %v265_v22 = vsel %vm250_vm0, %v1146_v12, 0.0  ;;  %v298_v23 = vmul.f32 %v1143_v11, %v1143_v11  ;;  %v299_v24 = vmul.f32 %v1146_v12, %v1146_v12  ;;  %v1185_v29 = vld [vmem:[%s1126_s4 + $0x50] sm:$0xff]  ;;  %s902_s10 = smov [#allocation8]  }
  0x72   : > { %388 = vperm.xlu1 %715, %v366_v3   ;;  %378 = vperm.xlu0 %714, %v364_v4   ;;  %v277_v25 = vsel %vm250_vm0, %v1149_v13, 0.0  ;;  %v278_v26 = vsel %vm250_vm0, %v1152_v14, 0.0  ;;  %v302_v27 = vmul.f32 %v1149_v13, %v1149_v13  ;;  %v303_v28 = vmul.f32 %v1152_v14, %v1152_v14  ;;  %v1192_v33 = vld [vmem:[%s1126_s4 + $0x18] sm:$0xff]  ;;  %p810_p1 = pnand %p809_p8, %p1361_p12  ;;  %s812_s21 = sshll.u32 %s902_s10, 4  ;;  %s813_s21 = int_to_ptr.vmem [resolvable:$false] %s812_s21 }
  0x73   : > { %v253_v30 = vadd.f32 %v252_v18, %v251_v17  ;;  %v254_v31 = vsel %vm250_vm0, %v1155_v15, 0.0  ;;  %v267_v32 = vsel %vm250_vm0, %v1158_v16, 0.0  ;;  %v1195_v34 = vld [vmem:[%s1126_s4 + $0x38] sm:$0xff]  ;;  %v266_v35 = vadd.f32 %v265_v22, %v264_v21  ;;  %s814_s30 = scalar_lea.vmem %s813_s21, 3072  ;;  %p815_p3 = scmp.lt.s32.totalorder %s1290_s15, %s813_s21 }
  0x74   : > { %v296_v36 = vmul.f32 %v1155_v15, %v1155_v15  ;;  %v306_v37 = vsel %vm250_vm0, %v294_v19, 0.0  ;;  %v307_v38 = vsel %vm250_vm0, %v295_v20, 0.0  ;;  %v279_v39 = vadd.f32 %v278_v26, %v277_v25  ;;  %v1212_v47 = vld [vmem:[%s1126_s4 + $0x58] sm:$0xff]  ;;  %p811_p10 = pneg %p810_p1  ;;  %p816_p5 = scmp.lt.s32.totalorder %s814_s30, %s808_s9 }
  0x75   : > { %v300_v40 = vmul.f32 %v1158_v16, %v1158_v16  ;;  %v319_v41 = vsel %vm250_vm0, %v298_v23, 0.0  ;;  %v320_v42 = vsel %vm250_vm0, %v299_v24, 0.0  ;;  %v280_v43 = vsel %vm250_vm0, %v1185_v29, 0.0 }
  0x76   : > { %422 = vperm.xlu1 %715, %v368_v5   ;;  %417 = vperm.xlu0 %714, %v367_v6   ;;  %v304_v44 = vmul.f32 %v1185_v29, %v1185_v29  ;;  %v332_v45 = vsel %vm250_vm0, %v302_v27, 0.0  ;;  %v333_v46 = vsel %vm250_vm0, %v303_v28, 0.0  ;;  %v255_v48 = vadd.f32 %v254_v31, %v253_v30  ;;  %p817_p9 = por %p816_p5, %p815_p3 }
  0x77   : > { %v256_v49 = vsel %vm250_vm0, %v1192_v33, 0.0  ;;  %v269_v50 = vsel %vm250_vm0, %v1195_v34, 0.0  ;;  %v308_v51 = vadd.f32 %v307_v38, %v306_v37  ;;  %v268_v52 = vadd.f32 %v267_v32, %v266_v35 }
  0x78   : > { %v297_v53 = vmul.f32 %v1192_v33, %v1192_v33  ;;  %v309_v54 = vsel %vm250_vm0, %v296_v36, 0.0  ;;  %v321_v55 = vadd.f32 %v320_v42, %v319_v41  ;;  %v281_v56 = vadd.f32 %v280_v43, %v279_v39  ;;  %p818_p2 = pnand %p817_p9, %p811_p10 }
  0x79   : > { %v301_v57 = vmul.f32 %v1195_v34, %v1195_v34  ;;  %v322_v58 = vsel %vm250_vm0, %v300_v40, 0.0  ;;  %v334_v59 = vadd.f32 %v333_v46, %v332_v45  ;;  %v282_v60 = vsel %vm250_vm0, %v1212_v47, 0.0 }
  0x7a   : > { %432 = vperm.xlu1 %715, %v370_v7   ;;  %427 = vperm.xlu0 %714, %v369_v8   ;;  %v305_v61 = vmul.f32 %v1212_v47, %v1212_v47  ;;  %v335_v62 = vsel %vm250_vm0, %v304_v44, 0.0  ;;  %v257_v63 = vadd.f32 %v256_v49, %v255_v48  ;;  %v310_v0 = vadd.f32 %v309_v54, %v308_v51 }
  0x7b   : > { %v270_v1 = vadd.f32 %v269_v50, %v268_v52  ;;  %v311_v2 = vsel %vm250_vm0, %v297_v53, 0.0  ;;  %v323_v3 = vadd.f32 %v322_v58, %v321_v55  ;;  %v283_v4 = vadd.f32 %v282_v60, %v281_v56 }
  0x7c   : > { %v324_v5 = vsel %vm250_vm0, %v301_v57, 0.0  ;;  %v336_v6 = vadd.f32 %v335_v62, %v334_v59  ;;  %v337_v7 = vsel %vm250_vm0, %v305_v61, 0.0  ;;  %v258_v8 = vrot.slane %v257_v63, 4 }
  0x7d   : > { %v312_v17 = vadd.f32 %v311_v2, %v310_v0  ;;  %v271_v18 = vrot.slane %v270_v1, 4  ;;  %v325_v19 = vadd.f32 %v324_v5, %v323_v3  ;;  %v284_v20 = vrot.slane %v283_v4, 4 }
  0x7e   : > { %v338_v21 = vadd.f32 %v337_v7, %v336_v6  ;;  %v259_v22 = vadd.f32 %v258_v8, %v257_v63 }
  0x7f   : > { %v313_v23 = vrot.slane %v312_v17, 4  ;;  %v272_v24 = vadd.f32 %v271_v18, %v270_v1  ;;  %v326_v25 = vrot.slane %v325_v19, 4  ;;  %v285_v26 = vadd.f32 %v284_v20, %v283_v4 }
  0x80   : > { %v339_v27 = vrot.slane %v338_v21, 4  ;;  %v260_v28 = vrot.slane %v259_v22, 2 }
  0x81   : > { %v314_v30 = vadd.f32 %v313_v23, %v312_v17  ;;  %v273_v31 = vrot.slane %v272_v24, 2  ;;  %v327_v32 = vadd.f32 %v326_v25, %v325_v19  ;;  %v286_v35 = vrot.slane %v285_v26, 2 }
  0x82   : > { %v340_v36 = vadd.f32 %v339_v27, %v338_v21  ;;  %v261_v37 = vadd.f32 %v260_v28, %v259_v22 }
  0x83   : > { %v315_v38 = vrot.slane %v314_v30, 2  ;;  %v274_v39 = vadd.f32 %v273_v31, %v272_v24  ;;  %v328_v40 = vrot.slane %v327_v32, 2  ;;  %v287_v41 = vadd.f32 %v286_v35, %v285_v26 }
  0x84   : > { %v341_v42 = vrot.slane %v340_v36, 2  ;;  %v262_v43 = vrot.slane %v261_v37, 1 }
  0x85   : > { %v316_v44 = vadd.f32 %v315_v38, %v314_v30  ;;  %v275_v45 = vrot.slane %v274_v39, 1  ;;  %v329_v46 = vadd.f32 %v328_v40, %v327_v32  ;;  %v288_v48 = vrot.slane %v287_v41, 1 }
  0x86   : > { %v342_v49 = vadd.f32 %v341_v42, %v340_v36  ;;  %v263_v50 = vadd.f32 %v262_v43, %v261_v37 }
  0x87   : > { %v317_v51 = vrot.slane %v316_v44, 1  ;;  %v276_v52 = vadd.f32 %v275_v45, %v274_v39  ;;  %v330_v53 = vrot.slane %v329_v46, 1  ;;  %v289_v54 = vadd.f32 %v288_v48, %v287_v41 }
  0x88   : > { %v343_v55 = vrot.slane %v342_v49, 1  ;;  %v1232_v56 = vmul.f32 0.03125, %v263_v50 }
  0x89   : > { %v318_v57 = vadd.f32 %v317_v51, %v316_v44  ;;  %v1234_v58 = vmul.f32 0.03125, %v276_v52  ;;  %v331_v59 = vadd.f32 %v330_v53, %v329_v46  ;;  %v1236_v60 = vmul.f32 0.03125, %v289_v54 }
  0x8a   : > { %v344_v61 = vadd.f32 %v343_v55, %v342_v49  ;;  %v348_v63 = vmul.f32 %v1232_v56, %v1232_v56 }
  0x8b   : > { %v345_v62 = vmul.f32 0.03125, %v318_v57  ;;  %v346_v0 = vmul.f32 0.03125, %v331_v59  ;;  %v349_v1 = vmul.f32 %v1234_v58, %v1234_v58  ;;  %v350_v3 = vmul.f32 %v1236_v60, %v1236_v60 }
  0x8c   : > { %v347_v2 = vmul.f32 0.03125, %v344_v61 }
  0x8d   : > { %v351_v4 = vsub.f32 %v345_v62, %v348_v63  ;;  %v352_v5 = vsub.f32 %v346_v0, %v349_v1 }
  0x8e   : > { %v353_v6 = vsub.f32 %v347_v2, %v350_v3 }
  0x8f   : > { %v354_v7 = vmax.f32 %v351_v4, 0.0  ;;  %v355_v8 = vmax.f32 %v352_v5, 0.0 }
  0x90   : > { %v356_v17 = vmax.f32 %v353_v6, 0.0 }
  0x91   : > { %v357_v18 = vadd.f32 1e-05, %v354_v7  ;;  %v358_v19 = vadd.f32 1e-05, %v355_v8 }
  0x92   : > { %v359_v20 = vadd.f32 1e-05, %v356_v17 }
  0x93   : > { %716 = vrsqrt.f32 %v357_v18 }
  0x94   : > { %718 = vrsqrt.f32 %v358_v19 }
  0x95   : > { %720 = vrsqrt.f32 %v359_v20 }
  0x9d   : > { %v717_v21 = vpop.eup %716 }
  0x9e   : > { %v719_v22 = vpop.eup %718 }
  0x9f   : > { %v721_v23 = vpop.eup %720 }
  0xed   : > { %v384_v24 = vpop.permute.xlu1 %383  ;;  %v374_v25 = vpop.permute.xlu0 %373 }
  0xee   : > { %v393_v26 = vmul.f32 %v717_v21, %v384_v24  ;;  %v397_v27 = vmul.f32 %v719_v22, %v384_v24  ;;  %v391_v28 = vmul.f32 %v717_v21, %v374_v25  ;;  %v395_v30 = vmul.f32 %v719_v22, %v374_v25 }
  0xef   : > { %v399_v31 = vmul.f32 %v721_v23, %v374_v25  ;;  %v401_v32 = vmul.f32 %v721_v23, %v384_v24 }
  0xf0   : > { %v1245_v35 = vmul.f32 %v393_v26, %v1155_v15  ;;  %v1248_v36 = vmul.f32 %v397_v27, %v1158_v16  ;;  %v447_v37 = vmul.f32 %v391_v28, %v1137_v9  ;;  %v451_v38 = vmul.f32 %v395_v30, %v1143_v11 }
  0xf1   : > { %v455_v39 = vmul.f32 %v399_v31, %v1149_v13  ;;  %v389_v40 = vpop.permute.xlu1 %388  ;;  %v379_v41 = vpop.permute.xlu0 %378  ;;  %v403_v42 = vmul.f32 %v391_v28, %v1232_v56  ;;  %v407_v46 = vmul.f32 %v395_v30, %v1234_v58  ;;  %v411_v16 = vmul.f32 %v399_v31, %v1236_v60 }
  0xf2   : > { %v394_v43 = vmul.f32 %v717_v21, %v389_v40  ;;  %v398_v44 = vmul.f32 %v719_v22, %v389_v40  ;;  %v392_v45 = vmul.f32 %v717_v21, %v379_v41  ;;  %v402_v15 = vmul.f32 %v721_v23, %v389_v40 }
  0xf3   : > { %v396_v48 = vmul.f32 %v719_v22, %v379_v41  ;;  %v400_v49 = vmul.f32 %v721_v23, %v379_v41  ;;  %v405_v50 = vmul.f32 %v393_v26, %v1232_v56  ;;  %v409_v8 = vmul.f32 %v397_v27, %v1234_v58 }
  0xf4   : > { %v450_v9 = vmul.f32 %v394_v43, %v1192_v33  ;;  %v454_v11 = vmul.f32 %v398_v44, %v1195_v34  ;;  %v448_v13 = vmul.f32 %v392_v45, %v1140_v10  ;;  %v404_v54 = vmul.f32 %v392_v45, %v1232_v56 }
  0xf5   : > { %v452_v51 = vmul.f32 %v396_v48, %v1146_v12  ;;  %v456_v52 = vmul.f32 %v400_v49, %v1152_v14  ;;  %v423_v53 = vpop.permute.xlu1 %422  ;;  %v408_v55 = vmul.f32 %v396_v48, %v1234_v58  ;;  %v418_v57 = vpop.permute.xlu0 %417  ;;  %v412_v59 = vmul.f32 %v400_v49, %v1236_v60 }
  0xf6   : > { %v435_v61 = vsub.f32 %v418_v57, %v403_v42  ;;  %v439_v33 = vsub.f32 %v418_v57, %v407_v46  ;;  %v443_v34 = vsub.f32 %v418_v57, %v411_v16  ;;  %v436_v62 = vsub.f32 %v423_v53, %v404_v54 }
  0xf7   : > { %v440_v10 = vsub.f32 %v423_v53, %v408_v55  ;;  %v406_v63 = vmul.f32 %v394_v43, %v1232_v56  ;;  %v410_v12 = vmul.f32 %v398_v44, %v1234_v58  ;;  %v444_v14 = vsub.f32 %v423_v53, %v412_v59 }
  0xf8   : > { %v459_v0 = vadd.f32 %v447_v37, %v435_v61  ;;  %v463_v1 = vadd.f32 %v451_v38, %v439_v33  ;;  %v467_v2 = vadd.f32 %v455_v39, %v443_v34  ;;  %v460_v3 = vadd.f32 %v448_v13, %v436_v62 }
  0xf9   : > { %v464_v4 = vadd.f32 %v452_v51, %v440_v10  ;;  %v433_v5 = vpop.permute.xlu1 %432  ;;  %v414_v6 = vmul.f32 %v402_v15, %v1236_v60  ;;  %v428_v7 = vpop.permute.xlu0 %427  ;;  %v468_v17 = vadd.f32 %v456_v52, %v444_v14  ;;  %v413_v19 = vmul.f32 %v401_v32, %v1236_v60 }
  0xfa   : > { %471 = vst.msk [vmem:[%s235_s22] sm:$0xff] %vm250_vm0, %v459_v0  ;;  %475 = vst.msk [vmem:[%s235_s22 + $0x20] sm:$0xff] %vm250_vm0, %v463_v1  ;;  %v438_v56 = vsub.f32 %v433_v5, %v406_v63  ;;  %v442_v18 = vsub.f32 %v433_v5, %v410_v12  ;;  %v458_v20 = vmul.f32 %v402_v15, %v1212_v47 }
  0xfb   : > { %479 = vst.msk [vmem:[%s235_s22 + $0x40] sm:$0xff] %vm250_vm0, %v467_v2  ;;  %472 = vst.msk [vmem:[%s235_s22 + $0x8] sm:$0xff] %vm250_vm0, %v460_v3  ;;  %v446_v58 = vsub.f32 %v433_v5, %v414_v6  ;;  %v437_v21 = vsub.f32 %v428_v7, %v405_v50  ;;  %v441_v22 = vsub.f32 %v428_v7, %v409_v8 }
  0xfc   : > { %476 = vst.msk [vmem:[%s235_s22 + $0x28] sm:$0xff] %vm250_vm0, %v464_v4  ;;  %v457_v23 = vmul.f32 %v401_v32, %v1185_v29  ;;  %480 = vst.msk [vmem:[%s235_s22 + $0x48] sm:$0xff] %vm250_vm0, %v468_v17  ;;  %v462_v24 = vadd.f32 %v450_v9, %v438_v56  ;;  %v466_v25 = vadd.f32 %v454_v11, %v442_v18 }
  0xfd   : > { %v445_v26 = vsub.f32 %v428_v7, %v413_v19  ;;  %v470_v60 = vadd.f32 %v458_v20, %v446_v58  ;;  %v461_v47 = vadd.f32 %v1245_v35, %v437_v21  ;;  %v465_v27 = vadd.f32 %v1248_v36, %v441_v22 }
  0xfe   : > { %474 = vst.msk [vmem:[%s235_s22 + $0x18] sm:$0xff] %vm250_vm0, %v462_v24  ;;  %478 = vst.msk [vmem:[%s235_s22 + $0x38] sm:$0xff] %vm250_vm0, %v466_v25 }
  0xff   : > { %v469_v29 = vadd.f32 %v457_v23, %v445_v26  ;;  %482 = vst.msk [vmem:[%s235_s22 + $0x58] sm:$0xff] %vm250_vm0, %v470_v60  ;;  %473 = vst.msk [vmem:[%s235_s22 + $0x10] sm:$0xff] %vm250_vm0, %v461_v47 }
 0x100   : > { %477 = vst.msk [vmem:[%s235_s22 + $0x30] sm:$0xff] %vm250_vm0, %v465_v27 }
 0x101   : > { %481 = vst.msk [vmem:[%s235_s22 + $0x50] sm:$0xff] %vm250_vm0, %v469_v29 }
 0x102   : > { %821 = shalt.err (!%p818_p2)
}
 0x103   : > { %s822_s26 = scalar_lea.hbm %s1286_s18, 1536  ;;  %s826_s6 = scalar_lea.hbm %s1346_s3, 3072 }
 0x104   : > { %p823_p0 = scmp.ne.s32.totalorder %s1286_s18, %s822_s26  ;;  %p827_p6 = scmp.lt.u32.totalorder %s1286_s18, %s1346_s3 }
 0x105   : > { %p828_p7 = scmp.lt.u32.totalorder %s826_s6, %s822_s26  ;;  %p830_p8 = scmp.lt.u32.totalorder %s822_s26, %s1286_s18 }
 0x106   : > { %p824_p4 = pnand %p823_p0, %p1361_p12 }
 0x107   : > { %p829_p11 = por %p828_p7, %p827_p6 }
 0x108   : > { %p825_p13 = pneg %p824_p4 }
 0x109   : > { %p831_p1 = por %p830_p8, %p829_p11 }
 0x10b   : > { %p832_p10 = pnand %p831_p1, %p825_p13 }
 0x10d   : > { %835 = shalt.err (!%p832_p10)
}
 0x10e   : > { %s903_s20 = smov 128   ;;  %s904_s22 = smov 8  }
 0x10f   : > { %636 = dma.vmem_to_hbm [thread:$0]  (%p1361_p12), %s1290_s15, 1536, %s1286_s18, %s484_s8, %s903_s20, %s903_s20, %s904_s22  }
 0x110 PF: > { %s514_s24 = sand.u32 1, %s874_s12   ;;  %p1362_p3 = scmp.ne.s32.totalorder %s1354_s23, 0 }
 0x111   : > { %p1363_p5 = scmp.ge.s32.totalorder %s894_s17, 2  ;;  %s515_s11 = scalar_lea.sflag [#allocation4], %s514_s24 }
 0x113   : > { %p650_p9 = pnand %p1363_p5, %p1362_p3 }
 0x115   : > { %869 = dma.done.wait (!%p650_p9), %s515_s11, 1536  }
 0x116   : > { %871 = vsyncadd (!%p650_p9), %s515_s11, 4294965760  ;;  %s20_s17 = sadd.s32 1, %s894_s17   ;;  %s1364_s12 = smov %s878_s13 }
 0x117   : > { %p17_p2 = scmp.ge.s32.totalorder %s20_s17, 4   ;;  %s1365_s13 = smov %s882_s14 }
 0x118   : > { %s1366_s14 = smov %s1076_s5  ;;  %s1367_s15 = smov %s890_s16 }
 0x119   : > { %s1368_s16 = smov %s1370_s27  ;;  %19 = sbr.rel (!%p17_p2) target bundleno = 7 (0x7), region = 85 }
 0x120   :  { %520 = vsyncpa [#allocation3], 1 }
 0x121   :  { %522 = vsyncpa [#allocation3 + $0x1], 1 }
 0x122   :  { %523 = vsyncpa [#allocation6], 1 }
 0x123   :  { %524 = vsyncpa [#allocation4], 1 }
 0x124   :  { %526 = vsyncpa [#allocation4 + $0x1], 1 }

</bundles_post_ra>
